<compile_context>
chip_gen: v6e
topology: v6e:2x2x1
jax: 0.10.0
libtpu: 0.0.40
codegen_flags: <defaults>
</compile_context>

<pallas_src>
import functools

import jax
import jax.numpy as jnp
from jax.experimental import pallas as pl
from jax.experimental.pallas import tpu as pltpu


def _round_up(v, m):
    return (v + m - 1) // m * m


def _pick_batch_tile(B, per_sample_bytes, target_bytes=2 * 1024 * 1024):
    """Largest divisor of B whose block fits ~target_bytes, preferring >=2 grid steps."""
    divisors = [d for d in range(1, B + 1) if B % d == 0]
    fit = [d for d in divisors if d * per_sample_bytes <= target_bytes] or [1]
    for min_steps in (4, 2, 1):
        cand = [d for d in fit if B // d >= min_steps]
        if cand:
            return max(cand)
    return 1


def scconv_kernel(x_ref, cvec_ref, gavg_ref, masks_ref, wsq_ref, wy1_ref,
                  wy2_ref, o_ref, *, gate_treshold, gn_eps, W, up_sq_p, half):
    batch_tile = x_ref.shape[0]

    # Grid-invariant parameters: load once per grid step, reuse across samples.
    cvec = cvec_ref[...]                       # (C, 4) = [gn_w, gn_b, w_gamma, b_gwc]
    gn_w = cvec[:, 0:1]
    gn_b = cvec[:, 1:2]
    w_gamma = cvec[:, 2:3]
    b_gwc = cvec[:, 3:4]
    gavg = gavg_ref[...]                       # (C, C) group-average matrix (incl. 1/HW)
    masks = masks_ref[...]                     # (9, HW) border-validity masks
    wsq = wsq_ref[...]                         # (up_sq_p + low_sq_p, C)
    wy1 = wy1_ref[...]                         # (C, 9 * up_sq_p)
    wy2 = wy2_ref[...]                         # (C, low_sq_p)

    def one_sample(i):
        x = x_ref[i]                                           # (C, HW), f32

        # ---------- GroupNorm, one pass (E[x^2]-E[x]^2), no per-group slicing ----
        gx = jnp.dot(gavg, x, preferred_element_type=jnp.float32)       # (C, HW)
        gx2 = jnp.dot(gavg, x * x, preferred_element_type=jnp.float32)
        mean_c = jnp.sum(gx, axis=1, keepdims=True)                     # (C, 1)
        ex2_c = jnp.sum(gx2, axis=1, keepdims=True)
        rstd_c = jax.lax.rsqrt(ex2_c - mean_c * mean_c + gn_eps)
        a = rstd_c * gn_w                                               # fused affine
        b = gn_b - mean_c * a
        gn_x = x * a + b

        # ---------- SRU gating + cross-reconstruct (no w1/w2/x1/x2 temps) --------
        rew = jax.nn.sigmoid(gn_x * w_gamma)
        gate = rew > gate_treshold
        p = rew * x
        # y[:C/2] = (w1*x)[:C/2] + (w2*x)[C/2:] ;  y[C/2:] = (w1*x)[C/2:] + (w2*x)[:C/2]
        y = jnp.where(gate, x, p) + jnp.roll(jnp.where(gate, 0.0, p), half, axis=0)

        # ---------- CRU squeeze: fused block-diagonal 1x1, rows padded to 8 ------
        sq = jnp.dot(wsq, y, preferred_element_type=jnp.float32)
        up_s = sq[:up_sq_p]                                    # 8-row aligned slice
        low_s = sq[up_sq_p:]

        # ---------- GWC(3x3 grouped)+PWC1 as ONE matmul over 9 masked shifts -----
        shifts = []
        t = 0
        for dy in (-1, 0, 1):
            for dx in (-1, 0, 1):
                off = dy * W + dx
                if off == 0:
                    shifts.append(up_s)
                else:
                    shifts.append(jnp.roll(up_s, -off, axis=1) * masks[t:t + 1, :])
                t += 1
        stacked = jnp.concatenate(shifts, axis=0)              # (9*up_sq_p, HW), aligned
        y1 = jnp.dot(wy1, stacked, preferred_element_type=jnp.float32) + b_gwc

        # ---------- PWC2 + identity concat fused: W_y2 = [w_pwc2 ; I] ------------
        y2 = jnp.dot(wy2, low_s, preferred_element_type=jnp.float32)

        # ---------- channel attention: softmax over 2C pooled channels, no concat
        p1 = jnp.mean(y1, axis=1, keepdims=True)               # (C, 1)
        p2 = jnp.mean(y2, axis=1, keepdims=True)
        m = jnp.maximum(jnp.max(p1, axis=0, keepdims=True),
                        jnp.max(p2, axis=0, keepdims=True))    # (1, 1)
        e1 = jnp.exp(p1 - m)
        e2 = jnp.exp(p2 - m)
        inv = 1.0 / (jnp.sum(e1, axis=0, keepdims=True)
                     + jnp.sum(e2, axis=0, keepdims=True))
        o_ref[i] = ((e1 * inv) * y1 + (e2 * inv) * y2).astype(o_ref.dtype)

    if batch_tile <= 8:
        for i in range(batch_tile):            # short static unroll
            one_sample(i)
    else:
        def body(i, carry):
            one_sample(i)
            return carry
        jax.lax.fori_loop(0, batch_tile, body, 0)


def scconv(x, params, *, group_num=4, gate_treshold=0.5, alpha=0.5,
           squeeze_radio=2, group_size=2, gn_eps=1e-5):
    B, C, H, W = x.shape
    HW = H * W
    f32 = jnp.float32

    assert C % group_num == 0 and C % 2 == 0
    up_c = int(alpha * C)
    low_c = C - up_c
    up_sq_c = up_c // squeeze_radio
    low_sq_c = low_c // squeeze_radio
    assert up_sq_c % group_size == 0 and C % group_size == 0

    # Pad squeezed-channel counts to f32 sublane groups (8 rows) so every in-kernel
    # channel split / concat is tile-aligned (no VMEM relayout copies).
    up_sq_p = _round_up(up_sq_c, 8)
    low_sq_p = _round_up(low_sq_c, 8)

    # --------------- host-side parameter prep / weight fusion -------------------
    gn_w = params["gn_w"].reshape(C, 1).astype(f32)
    gn_b = params["gn_b"].reshape(C, 1).astype(f32)
    w_gamma = (params["gn_w"] / jnp.sum(params["gn_w"])).reshape(C, 1).astype(f32)
    b_gwc = params["b_gwc"].reshape(C, 1).astype(f32)
    cvec = jnp.concatenate([gn_w, gn_b, w_gamma, b_gwc], axis=1)        # (C, 4)

    # Group-average matrix: lane-sum(gavg @ x) == per-group mean, replicated per channel.
    cg = C // group_num
    gidx = jnp.arange(C) // cg
    gavg = (gidx[:, None] == gidx[None, :]).astype(f32) / float(cg * HW)  # (C, C)

    # Fused squeeze1/squeeze2 (block-diagonal 1x1 convs), rows padded to 8-multiples.
    w_sq1 = params["w_sq1"].reshape(up_sq_c, up_c).astype(f32)
    w_sq2 = params["w_sq2"].reshape(low_sq_c, low_c).astype(f32)
    w_sq_blk = jnp.zeros((up_sq_p + low_sq_p, C), f32)
    w_sq_blk = w_sq_blk.at[:up_sq_c, :up_c].set(w_sq1)
    w_sq_blk = w_sq_blk.at[up_sq_p:up_sq_p + low_sq_c, up_c:].set(w_sq2)

    # Densify grouped 3x3 conv per tap, fold PWC1 into the center tap, pad K dim.
    w_gwc = params["w_gwc"].astype(f32)                 # (C, up_sq_c // groups, 3, 3)
    out_pg = C // group_size
    in_pg = up_sq_c // group_size
    dense = jnp.zeros((3, 3, C, up_sq_p), f32)
    for g in range(group_size):
        o0, i0 = g * out_pg, g * in_pg
        dense = dense.at[:, :, o0:o0 + out_pg, i0:i0 + in_pg].set(
            jnp.transpose(w_gwc[o0:o0 + out_pg], (2, 3, 0, 1)))
    w_pwc1 = params["w_pwc1"].reshape(C, up_sq_c).astype(f32)
    dense = dense.at[1, 1, :, :up_sq_c].add(w_pwc1)     # center tap <- + PWC1
    w_y1 = jnp.transpose(dense, (2, 0, 1, 3)).reshape(C, 9 * up_sq_p)

    # PWC2 + identity concat fused, K padded to low_sq_p.
    w_pwc2 = params["w_pwc2"].reshape(C - low_sq_c, low_sq_c).astype(f32)
    w_y2 = jnp.zeros((C, low_sq_p), f32)
    w_y2 = w_y2.at[:C - low_sq_c, :low_sq_c].set(w_pwc2)
    w_y2 = w_y2.at[C - low_sq_c:, :low_sq_c].set(jnp.eye(low_sq_c, dtype=f32))

    # Border-validity masks for the 9 spatial taps (center row unused / all ones).
    pos = jnp.arange(HW)
    row = pos // W
    col = pos % W
    mask_rows = []
    for dy in (-1, 0, 1):
        for dx in (-1, 0, 1):
            valid = ((row + dy >= 0) & (row + dy < H) &
                     (col + dx >= 0) & (col + dx < W))
            mask_rows.append(valid.astype(f32))
    masks = jnp.stack(mask_rows, axis=0)                # (9, HW)

    # --------------- batch blocking / launch ------------------------------------
    per_sample_bytes = C * HW * 4
    Bt = _pick_batch_tile(B, per_sample_bytes)
    grid = (B // Bt,)

    x_flat = x.reshape(B, C, HW).astype(f32)

    kernel = functools.partial(
        scconv_kernel, gate_treshold=gate_treshold, gn_eps=gn_eps, W=W,
        up_sq_p=up_sq_p, half=C // 2)

    def full_spec(a):
        return pl.BlockSpec(a.shape, lambda b, n=a.ndim: (0,) * n)

    # Explicit VMEM budget: double-buffered in/out blocks + weights + temporaries.
    block_bytes = Bt * per_sample_bytes
    weight_bytes = 4 * (C * 4 + C * C + 9 * HW + (up_sq_p + low_sq_p) * C
                        + C * 9 * up_sq_p + C * low_sq_p)
    temp_bytes = (12 * C + 12 * up_sq_p + 2 * low_sq_p) * HW * 4
    vmem_limit = int(min(max(4 * block_bytes + weight_bytes + temp_bytes
                             + (4 << 20), 32 << 20), 64 << 20))

    out = pl.pallas_call(
        kernel,
        out_shape=jax.ShapeDtypeStruct((B, C, HW), x.dtype),
        grid=grid,
        in_specs=[
            pl.BlockSpec((Bt, C, HW), lambda b: (b, 0, 0)),
            full_spec(cvec), full_spec(gavg), full_spec(masks),
            full_spec(w_sq_blk), full_spec(w_y1), full_spec(w_y2),
        ],
        out_specs=pl.BlockSpec((Bt, C, HW), lambda b: (b, 0, 0)),
        compiler_params=pltpu.CompilerParams(
            dimension_semantics=("parallel",),
            vmem_limit_bytes=vmem_limit),
    )(x_flat, cvec, gavg, masks, w_sq_blk, w_y1, w_y2)
    return out.reshape(B, C, H, W)


def scconv_ref(x, params, *, group_num=4, gate_treshold=0.5, alpha=0.5,
               squeeze_radio=2, groups=2, eps=1e-5):
    """Pure-JAX reference mirroring the PyTorch forward (NCHW)."""
    B, C, H, W = x.shape
    gw, gb = params["gn_w"], params["gn_b"]
    # GroupNorm
    xg = x.reshape(B, group_num, -1)
    mu = xg.mean(axis=2, keepdims=True)
    var = xg.var(axis=2, keepdims=True)
    xn = ((xg - mu) / jnp.sqrt(var + eps)).reshape(B, C, H, W)
    gn_x = xn * gw.reshape(1, C, 1, 1) + gb.reshape(1, C, 1, 1)
    # SRU gating + reconstruct
    w_gamma = (gw / jnp.sum(gw)).reshape(1, C, 1, 1)
    rew = jax.nn.sigmoid(gn_x * w_gamma)
    w1 = jnp.where(rew > gate_treshold, jnp.ones_like(rew), rew)
    w2 = jnp.where(rew > gate_treshold, jnp.zeros_like(rew), rew)
    x1, x2 = w1 * x, w2 * x
    half = C // 2
    y = jnp.concatenate([x1[:, :half] + x2[:, half:],
                         x1[:, half:] + x2[:, :half]], axis=1)
    # CRU
    up_c = int(alpha * C)
    up, low = y[:, :up_c], y[:, up_c:]
    up_s = jnp.einsum('oi,bihw->bohw', params["w_sq1"][:, :, 0, 0], up)
    low_s = jnp.einsum('oi,bihw->bohw', params["w_sq2"][:, :, 0, 0], low)
    gwc = jax.lax.conv_general_dilated(
        up_s, params["w_gwc"], window_strides=(1, 1), padding=((1, 1), (1, 1)),
        dimension_numbers=('NCHW', 'OIHW', 'NCHW'), feature_group_count=groups)
    gwc = gwc + params["b_gwc"].reshape(1, C, 1, 1)
    y1 = gwc + jnp.einsum('oi,bihw->bohw', params["w_pwc1"][:, :, 0, 0], up_s)
    y2 = jnp.concatenate(
        [jnp.einsum('oi,bihw->bohw', params["w_pwc2"][:, :, 0, 0], low_s), low_s],
        axis=1)
    out = jnp.concatenate([y1, y2], axis=1)
    pooled = out.mean(axis=(2, 3), keepdims=True)
    soft = jax.nn.softmax(pooled, axis=1)
    out = soft * out
    return out[:, :C] + out[:, C:]


if __name__ == "__main__":
    # Small shapes consistent with the module: C divisible by group_num(4), by 2
    # (SRU reconstruct), and up/low squeeze channels divisible by group_size(2).
    B, C, H, W = 2, 8, 16, 16
    group_num, gate_treshold = 4, 0.5
    alpha, squeeze_radio, group_size = 0.5, 2, 2

    up_c = int(alpha * C)
    low_c = C - up_c
    up_sq_c = up_c // squeeze_radio
    low_sq_c = low_c // squeeze_radio

    key = jax.random.PRNGKey(0)
    keys = jax.random.split(key, 9)
    x = jax.random.normal(keys[0], (B, C, H, W), jnp.float32)
    params = {
        "gn_w": 1.0 + 0.1 * jax.random.normal(keys[1], (C,), jnp.float32),
        "gn_b": 0.1 * jax.random.normal(keys[2], (C,), jnp.float32),
        "w_sq1": 0.3 * jax.random.normal(keys[3], (up_sq_c, up_c, 1, 1), jnp.float32),
        "w_sq2": 0.3 * jax.random.normal(keys[4], (low_sq_c, low_c, 1, 1), jnp.float32),
        "w_gwc": 0.3 * jax.random.normal(keys[5], (C, up_sq_c // group_size, 3, 3), jnp.float32),
        "b_gwc": 0.1 * jax.random.normal(keys[6], (C,), jnp.float32),
        "w_pwc1": 0.3 * jax.random.normal(keys[7], (C, up_sq_c, 1, 1), jnp.float32),
        "w_pwc2": 0.3 * jax.random.normal(keys[8], (C - low_sq_c, low_sq_c, 1, 1), jnp.float32),
    }

    out = scconv(x, params, group_num=group_num, gate_treshold=gate_treshold,
                 alpha=alpha, squeeze_radio=squeeze_radio, group_size=group_size)
    out = jax.block_until_ready(out)

    ref = scconv_ref(x, params, group_num=group_num, gate_treshold=gate_treshold,
                     alpha=alpha, squeeze_radio=squeeze_radio, groups=group_size)
    assert out.shape == (B, C, H, W)
    max_err = float(jnp.max(jnp.abs(out - ref)))
    assert jnp.allclose(out, ref, atol=2e-3, rtol=2e-3), f"mismatch vs reference, max_err={max_err}"

    print("KERNEL_OK")
</pallas_src>

<mosaic_0001>
module attributes {stable_mosaic.version = 11 : i64} {
  func.func @scconv_kernel(%arg0: i32, %arg1: memref<1x8x256xf32, #tpu.memory_space<vmem>>, %arg2: memref<8x4xf32, #tpu.memory_space<vmem>>, %arg3: memref<8x8xf32, #tpu.memory_space<vmem>>, %arg4: memref<9x256xf32, #tpu.memory_space<vmem>>, %arg5: memref<16x8xf32, #tpu.memory_space<vmem>>, %arg6: memref<8x72xf32, #tpu.memory_space<vmem>>, %arg7: memref<8x8xf32, #tpu.memory_space<vmem>>, %arg8: memref<1x8x256xf32, #tpu.memory_space<vmem>>) attributes {dimension_semantics = [#tpu.dimension_semantics<parallel>], iteration_bounds = array<i64: 2>, scalar_prefetch = 0 : i64, scratch_operands = 0 : i64, tpu.core_type = #tpu.core_type<tc>, window_params = [{transform_indices = @transform_0, window_bounds = array<i64: 1, 8, 256>}, {pipeline_mode = #tpu.pipeline_mode<synchronous>, transform_indices = @transform_1, window_bounds = array<i64: 8, 4>}, {pipeline_mode = #tpu.pipeline_mode<synchronous>, transform_indices = @transform_2, window_bounds = array<i64: 8, 8>}, {pipeline_mode = #tpu.pipeline_mode<synchronous>, transform_indices = @transform_3, window_bounds = array<i64: 9, 256>}, {pipeline_mode = #tpu.pipeline_mode<synchronous>, transform_indices = @transform_4, window_bounds = array<i64: 16, 8>}, {pipeline_mode = #tpu.pipeline_mode<synchronous>, transform_indices = @transform_5, window_bounds = array<i64: 8, 72>}, {pipeline_mode = #tpu.pipeline_mode<synchronous>, transform_indices = @transform_6, window_bounds = array<i64: 8, 8>}, {transform_indices = @transform_7, window_bounds = array<i64: 1, 8, 256>}]} {
    %c0 = arith.constant 0 : index
    %c0_0 = arith.constant 0 : index
    %0 = vector.load %arg2[%c0, %c0_0] : memref<8x4xf32, #tpu.memory_space<vmem>>, vector<8x4xf32>
    %1 = vector.extract_strided_slice %0 {offsets = [0, 0], sizes = [8, 1], strides = [1, 1]} : vector<8x4xf32> to vector<8x1xf32>
    %2 = vector.extract_strided_slice %0 {offsets = [0, 1], sizes = [8, 1], strides = [1, 1]} : vector<8x4xf32> to vector<8x1xf32>
    %3 = vector.extract_strided_slice %0 {offsets = [0, 2], sizes = [8, 1], strides = [1, 1]} : vector<8x4xf32> to vector<8x1xf32>
    %4 = vector.extract_strided_slice %0 {offsets = [0, 3], sizes = [8, 1], strides = [1, 1]} : vector<8x4xf32> to vector<8x1xf32>
    %c0_1 = arith.constant 0 : index
    %c0_2 = arith.constant 0 : index
    %5 = vector.load %arg3[%c0_1, %c0_2] : memref<8x8xf32, #tpu.memory_space<vmem>>, vector<8x8xf32>
    %c0_3 = arith.constant 0 : index
    %c0_4 = arith.constant 0 : index
    %6 = vector.load %arg4[%c0_3, %c0_4] : memref<9x256xf32, #tpu.memory_space<vmem>>, vector<9x256xf32>
    %c0_5 = arith.constant 0 : index
    %c0_6 = arith.constant 0 : index
    %7 = vector.load %arg5[%c0_5, %c0_6] : memref<16x8xf32, #tpu.memory_space<vmem>>, vector<16x8xf32>
    %c0_7 = arith.constant 0 : index
    %c0_8 = arith.constant 0 : index
    %8 = vector.load %arg6[%c0_7, %c0_8] : memref<8x72xf32, #tpu.memory_space<vmem>>, vector<8x72xf32>
    %c0_9 = arith.constant 0 : index
    %c0_10 = arith.constant 0 : index
    %9 = vector.load %arg7[%c0_9, %c0_10] : memref<8x8xf32, #tpu.memory_space<vmem>>, vector<8x8xf32>
    %c0_11 = arith.constant 0 : index
    %c0_12 = arith.constant 0 : index
    %c0_13 = arith.constant 0 : index
    %10 = vector.load %arg1[%c0_11, %c0_12, %c0_13] : memref<1x8x256xf32, #tpu.memory_space<vmem>>, vector<1x8x256xf32>
    %11 = vector.shape_cast %10 : vector<1x8x256xf32> to vector<8x256xf32>
    %cst = arith.constant dense<0.000000e+00> : vector<8x256xf32>
    %12 = tpu.matmul %5, %11, %cst {dimension_numbers = #tpu.dot_dimension_numbers<[1], [0], [0], [1], [0, 0, 1, 1], [], []>} : vector<8x8xf32>, vector<8x256xf32>, vector<8x256xf32> -> vector<8x256xf32>
    %13 = arith.mulf %11, %11 : vector<8x256xf32>
    %cst_14 = arith.constant dense<0.000000e+00> : vector<8x256xf32>
    %14 = tpu.matmul %5, %13, %cst_14 {dimension_numbers = #tpu.dot_dimension_numbers<[1], [0], [0], [1], [0, 0, 1, 1], [], []>} : vector<8x8xf32>, vector<8x256xf32>, vector<8x256xf32> -> vector<8x256xf32>
    %cst_15 = arith.constant dense<0.000000e+00> : vector<8xf32>
    %15 = vector.multi_reduction <add>, %12, %cst_15 [1] : vector<8x256xf32> to vector<8xf32>
    %16 = vector.shape_cast %15 : vector<8xf32> to vector<8x1xf32>
    %cst_16 = arith.constant dense<0.000000e+00> : vector<8xf32>
    %17 = vector.multi_reduction <add>, %14, %cst_16 [1] : vector<8x256xf32> to vector<8xf32>
    %18 = vector.shape_cast %17 : vector<8xf32> to vector<8x1xf32>
    %19 = arith.mulf %16, %16 : vector<8x1xf32>
    %20 = arith.subf %18, %19 : vector<8x1xf32>
    %cst_17 = arith.constant 9.99999974E-6 : f32
    %21 = vector.broadcast %cst_17 : f32 to vector<8x1xf32>
    %22 = arith.addf %20, %21 : vector<8x1xf32>
    %23 = math.rsqrt %22 : vector<8x1xf32>
    %24 = arith.mulf %23, %1 : vector<8x1xf32>
    %25 = arith.mulf %16, %24 : vector<8x1xf32>
    %26 = arith.subf %2, %25 : vector<8x1xf32>
    %27 = vector.broadcast %24 : vector<8x1xf32> to vector<8x256xf32>
    %28 = arith.mulf %11, %27 : vector<8x256xf32>
    %29 = vector.broadcast %26 : vector<8x1xf32> to vector<8x256xf32>
    %30 = arith.addf %28, %29 : vector<8x256xf32>
    %31 = vector.broadcast %3 : vector<8x1xf32> to vector<8x256xf32>
    %32 = arith.mulf %30, %31 : vector<8x256xf32>
    %33 = arith.negf %32 : vector<8x256xf32>
    %34 = math.exp %33 : vector<8x256xf32>
    %cst_18 = arith.constant 1.000000e+00 : f32
    %35 = vector.broadcast %cst_18 : f32 to vector<8x256xf32>
    %36 = arith.addf %35, %34 : vector<8x256xf32>
    %37 = arith.divf %35, %36 : vector<8x256xf32>
    %cst_19 = arith.constant 5.000000e-01 : f32
    %38 = vector.broadcast %cst_19 : f32 to vector<8x256xf32>
    %39 = arith.cmpf ogt, %37, %38 : vector<8x256xf32>
    %40 = arith.mulf %37, %11 : vector<8x256xf32>
    %41 = arith.select %39, %11, %40 : vector<8x256xi1>, vector<8x256xf32>
    %cst_20 = arith.constant 0.000000e+00 : f32
    %42 = vector.broadcast %cst_20 : f32 to vector<8x256xf32>
    %43 = arith.select %39, %42, %40 : vector<8x256xi1>, vector<8x256xf32>
    %44 = vector.extract_strided_slice %43 {offsets = [4, 0], sizes = [4, 256], strides = [1, 1]} : vector<8x256xf32> to vector<4x256xf32>
    %45 = vector.extract_strided_slice %43 {offsets = [0, 0], sizes = [4, 256], strides = [1, 1]} : vector<8x256xf32> to vector<4x256xf32>
    %46 = tpu.concatenate %44, %45 in 0 : vector<4x256xf32>, vector<4x256xf32> -> vector<8x256xf32>
    %47 = arith.addf %41, %46 : vector<8x256xf32>
    %cst_21 = arith.constant dense<0.000000e+00> : vector<16x256xf32>
    %48 = tpu.matmul %7, %47, %cst_21 {dimension_numbers = #tpu.dot_dimension_numbers<[1], [0], [0], [1], [0, 0, 1, 1], [], []>} : vector<16x8xf32>, vector<8x256xf32>, vector<16x256xf32> -> vector<16x256xf32>
    %49 = vector.extract_strided_slice %48 {offsets = [0, 0], sizes = [8, 256], strides = [1, 1]} : vector<16x256xf32> to vector<8x256xf32>
    %50 = vector.extract_strided_slice %48 {offsets = [8, 0], sizes = [8, 256], strides = [1, 1]} : vector<16x256xf32> to vector<8x256xf32>
    %51 = vector.extract_strided_slice %49 {offsets = [0, 239], sizes = [8, 17], strides = [1, 1]} : vector<8x256xf32> to vector<8x17xf32>
    %52 = vector.extract_strided_slice %49 {offsets = [0, 0], sizes = [8, 239], strides = [1, 1]} : vector<8x256xf32> to vector<8x239xf32>
    %53 = tpu.concatenate %51, %52 in 1 : vector<8x17xf32>, vector<8x239xf32> -> vector<8x256xf32>
    %54 = vector.extract_strided_slice %6 {offsets = [0, 0], sizes = [1, 256], strides = [1, 1]} : vector<9x256xf32> to vector<1x256xf32>
    %55 = vector.broadcast %54 : vector<1x256xf32> to vector<8x256xf32>
    %56 = arith.mulf %53, %55 : vector<8x256xf32>
    %57 = vector.extract_strided_slice %49 {offsets = [0, 240], sizes = [8, 16], strides = [1, 1]} : vector<8x256xf32> to vector<8x16xf32>
    %58 = vector.extract_strided_slice %49 {offsets = [0, 0], sizes = [8, 240], strides = [1, 1]} : vector<8x256xf32> to vector<8x240xf32>
    %59 = tpu.concatenate %57, %58 in 1 : vector<8x16xf32>, vector<8x240xf32> -> vector<8x256xf32>
    %60 = vector.extract_strided_slice %6 {offsets = [1, 0], sizes = [1, 256], strides = [1, 1]} : vector<9x256xf32> to vector<1x256xf32>
    %61 = vector.broadcast %60 : vector<1x256xf32> to vector<8x256xf32>
    %62 = arith.mulf %59, %61 : vector<8x256xf32>
    %63 = vector.extract_strided_slice %49 {offsets = [0, 241], sizes = [8, 15], strides = [1, 1]} : vector<8x256xf32> to vector<8x15xf32>
    %64 = vector.extract_strided_slice %49 {offsets = [0, 0], sizes = [8, 241], strides = [1, 1]} : vector<8x256xf32> to vector<8x241xf32>
    %65 = tpu.concatenate %63, %64 in 1 : vector<8x15xf32>, vector<8x241xf32> -> vector<8x256xf32>
    %66 = vector.extract_strided_slice %6 {offsets = [2, 0], sizes = [1, 256], strides = [1, 1]} : vector<9x256xf32> to vector<1x256xf32>
    %67 = vector.broadcast %66 : vector<1x256xf32> to vector<8x256xf32>
    %68 = arith.mulf %65, %67 : vector<8x256xf32>
    %69 = vector.extract_strided_slice %49 {offsets = [0, 255], sizes = [8, 1], strides = [1, 1]} : vector<8x256xf32> to vector<8x1xf32>
    %70 = vector.extract_strided_slice %49 {offsets = [0, 0], sizes = [8, 255], strides = [1, 1]} : vector<8x256xf32> to vector<8x255xf32>
    %71 = tpu.concatenate %69, %70 in 1 : vector<8x1xf32>, vector<8x255xf32> -> vector<8x256xf32>
    %72 = vector.extract_strided_slice %6 {offsets = [3, 0], sizes = [1, 256], strides = [1, 1]} : vector<9x256xf32> to vector<1x256xf32>
    %73 = vector.broadcast %72 : vector<1x256xf32> to vector<8x256xf32>
    %74 = arith.mulf %71, %73 : vector<8x256xf32>
    %75 = vector.extract_strided_slice %49 {offsets = [0, 1], sizes = [8, 255], strides = [1, 1]} : vector<8x256xf32> to vector<8x255xf32>
    %76 = vector.extract_strided_slice %49 {offsets = [0, 0], sizes = [8, 1], strides = [1, 1]} : vector<8x256xf32> to vector<8x1xf32>
    %77 = tpu.concatenate %75, %76 in 1 : vector<8x255xf32>, vector<8x1xf32> -> vector<8x256xf32>
    %78 = vector.extract_strided_slice %6 {offsets = [5, 0], sizes = [1, 256], strides = [1, 1]} : vector<9x256xf32> to vector<1x256xf32>
    %79 = vector.broadcast %78 : vector<1x256xf32> to vector<8x256xf32>
    %80 = arith.mulf %77, %79 : vector<8x256xf32>
    %81 = vector.extract_strided_slice %49 {offsets = [0, 15], sizes = [8, 241], strides = [1, 1]} : vector<8x256xf32> to vector<8x241xf32>
    %82 = vector.extract_strided_slice %49 {offsets = [0, 0], sizes = [8, 15], strides = [1, 1]} : vector<8x256xf32> to vector<8x15xf32>
    %83 = tpu.concatenate %81, %82 in 1 : vector<8x241xf32>, vector<8x15xf32> -> vector<8x256xf32>
    %84 = vector.extract_strided_slice %6 {offsets = [6, 0], sizes = [1, 256], strides = [1, 1]} : vector<9x256xf32> to vector<1x256xf32>
    %85 = vector.broadcast %84 : vector<1x256xf32> to vector<8x256xf32>
    %86 = arith.mulf %83, %85 : vector<8x256xf32>
    %87 = vector.extract_strided_slice %49 {offsets = [0, 16], sizes = [8, 240], strides = [1, 1]} : vector<8x256xf32> to vector<8x240xf32>
    %88 = vector.extract_strided_slice %49 {offsets = [0, 0], sizes = [8, 16], strides = [1, 1]} : vector<8x256xf32> to vector<8x16xf32>
    %89 = tpu.concatenate %87, %88 in 1 : vector<8x240xf32>, vector<8x16xf32> -> vector<8x256xf32>
    %90 = vector.extract_strided_slice %6 {offsets = [7, 0], sizes = [1, 256], strides = [1, 1]} : vector<9x256xf32> to vector<1x256xf32>
    %91 = vector.broadcast %90 : vector<1x256xf32> to vector<8x256xf32>
    %92 = arith.mulf %89, %91 : vector<8x256xf32>
    %93 = vector.extract_strided_slice %49 {offsets = [0, 17], sizes = [8, 239], strides = [1, 1]} : vector<8x256xf32> to vector<8x239xf32>
    %94 = vector.extract_strided_slice %49 {offsets = [0, 0], sizes = [8, 17], strides = [1, 1]} : vector<8x256xf32> to vector<8x17xf32>
    %95 = tpu.concatenate %93, %94 in 1 : vector<8x239xf32>, vector<8x17xf32> -> vector<8x256xf32>
    %96 = vector.extract_strided_slice %6 {offsets = [8, 0], sizes = [1, 256], strides = [1, 1]} : vector<9x256xf32> to vector<1x256xf32>
    %97 = vector.broadcast %96 : vector<1x256xf32> to vector<8x256xf32>
    %98 = arith.mulf %95, %97 : vector<8x256xf32>
    %99 = tpu.concatenate %56, %62, %68, %74, %49, %80, %86, %92, %98 in 0 : vector<8x256xf32>, vector<8x256xf32>, vector<8x256xf32>, vector<8x256xf32>, vector<8x256xf32>, vector<8x256xf32>, vector<8x256xf32>, vector<8x256xf32>, vector<8x256xf32> -> vector<72x256xf32>
    %cst_22 = arith.constant dense<0.000000e+00> : vector<8x256xf32>
    %100 = tpu.matmul %8, %99, %cst_22 {dimension_numbers = #tpu.dot_dimension_numbers<[1], [0], [0], [1], [0, 0, 1, 1], [], []>} : vector<8x72xf32>, vector<72x256xf32>, vector<8x256xf32> -> vector<8x256xf32>
    %101 = vector.broadcast %4 : vector<8x1xf32> to vector<8x256xf32>
    %102 = arith.addf %100, %101 : vector<8x256xf32>
    %cst_23 = arith.constant dense<0.000000e+00> : vector<8x256xf32>
    %103 = tpu.matmul %9, %50, %cst_23 {dimension_numbers = #tpu.dot_dimension_numbers<[1], [0], [0], [1], [0, 0, 1, 1], [], []>} : vector<8x8xf32>, vector<8x256xf32>, vector<8x256xf32> -> vector<8x256xf32>
    %cst_24 = arith.constant dense<0.000000e+00> : vector<8xf32>
    %104 = vector.multi_reduction <add>, %102, %cst_24 [1] : vector<8x256xf32> to vector<8xf32>
    %105 = vector.shape_cast %104 : vector<8xf32> to vector<8x1xf32>
    %cst_25 = arith.constant 2.560000e+02 : f32
    %106 = vector.broadcast %cst_25 : f32 to vector<8x1xf32>
    %107 = arith.divf %105, %106 : vector<8x1xf32>
    %cst_26 = arith.constant dense<0.000000e+00> : vector<8xf32>
    %108 = vector.multi_reduction <add>, %103, %cst_26 [1] : vector<8x256xf32> to vector<8xf32>
    %109 = vector.shape_cast %108 : vector<8xf32> to vector<8x1xf32>
    %cst_27 = arith.constant 2.560000e+02 : f32
    %110 = vector.broadcast %cst_27 : f32 to vector<8x1xf32>
    %111 = arith.divf %109, %110 : vector<8x1xf32>
    %cst_28 = arith.constant dense<0xFF800000> : vector<1xf32>
    %112 = vector.multi_reduction <maximumf>, %107, %cst_28 [0] : vector<8x1xf32> to vector<1xf32>
    %113 = vector.shape_cast %112 : vector<1xf32> to vector<1x1xf32>
    %cst_29 = arith.constant dense<0xFF800000> : vector<1xf32>
    %114 = vector.multi_reduction <maximumf>, %111, %cst_29 [0] : vector<8x1xf32> to vector<1xf32>
    %115 = vector.shape_cast %114 : vector<1xf32> to vector<1x1xf32>
    %116 = arith.maximumf %113, %115 : vector<1x1xf32>
    %117 = vector.broadcast %116 : vector<1x1xf32> to vector<8x1xf32>
    %118 = arith.subf %107, %117 : vector<8x1xf32>
    %119 = math.exp %118 : vector<8x1xf32>
    %120 = vector.broadcast %116 : vector<1x1xf32> to vector<8x1xf32>
    %121 = arith.subf %111, %120 : vector<8x1xf32>
    %122 = math.exp %121 : vector<8x1xf32>
    %cst_30 = arith.constant dense<0.000000e+00> : vector<1xf32>
    %123 = vector.multi_reduction <add>, %119, %cst_30 [0] : vector<8x1xf32> to vector<1xf32>
    %124 = vector.shape_cast %123 : vector<1xf32> to vector<1x1xf32>
    %cst_31 = arith.constant dense<0.000000e+00> : vector<1xf32>
    %125 = vector.multi_reduction <add>, %122, %cst_31 [0] : vector<8x1xf32> to vector<1xf32>
    %126 = vector.shape_cast %125 : vector<1xf32> to vector<1x1xf32>
    %127 = arith.addf %124, %126 : vector<1x1xf32>
    %cst_32 = arith.constant 1.000000e+00 : f32
    %128 = vector.broadcast %cst_32 : f32 to vector<1x1xf32>
    %129 = arith.divf %128, %127 : vector<1x1xf32>
    %130 = vector.broadcast %129 : vector<1x1xf32> to vector<8x1xf32>
    %131 = arith.mulf %119, %130 : vector<8x1xf32>
    %132 = vector.broadcast %131 : vector<8x1xf32> to vector<8x256xf32>
    %133 = arith.mulf %132, %102 : vector<8x256xf32>
    %134 = vector.broadcast %129 : vector<1x1xf32> to vector<8x1xf32>
    %135 = arith.mulf %122, %134 : vector<8x1xf32>
    %136 = vector.broadcast %135 : vector<8x1xf32> to vector<8x256xf32>
    %137 = arith.mulf %136, %103 : vector<8x256xf32>
    %138 = arith.addf %133, %137 : vector<8x256xf32>
    %c0_33 = arith.constant 0 : index
    %c0_34 = arith.constant 0 : index
    %c0_35 = arith.constant 0 : index
    %139 = vector.load %arg8[%c0_33, %c0_34, %c0_35] : memref<1x8x256xf32, #tpu.memory_space<vmem>>, vector<1x8x256xf32>
    %140 = vector.shape_cast %139 : vector<1x8x256xf32> to vector<8x256xf32>
    %141 = vector.shape_cast %138 : vector<8x256xf32> to vector<1x8x256xf32>
    tpu.vector_store %arg8[%c0_33, %c0_34, %c0_35], %141 {strides = array<i32>} : memref<1x8x256xf32, #tpu.memory_space<vmem>>, vector<1x8x256xf32>,
    return
  }
  func.func @transform_0(%arg0: i32) -> (i32, i32, i32) {
    %c0_i32 = arith.constant 0 : i32
    %c0_i32_0 = arith.constant 0 : i32
    %c0_i32_1 = arith.constant 0 : i32
    return %arg0, %c0_i32, %c0_i32_0 : i32, i32, i32
  }
  func.func @transform_1(%arg0: i32) -> (i32, i32) {
    %c0_i32 = arith.constant 0 : i32
    %c0_i32_0 = arith.constant 0 : i32
    %c0_i32_1 = arith.constant 0 : i32
    return %c0_i32, %c0_i32_0 : i32, i32
  }
  func.func @transform_2(%arg0: i32) -> (i32, i32) {
    %c0_i32 = arith.constant 0 : i32
    %c0_i32_0 = arith.constant 0 : i32
    %c0_i32_1 = arith.constant 0 : i32
    return %c0_i32, %c0_i32_0 : i32, i32
  }
  func.func @transform_3(%arg0: i32) -> (i32, i32) {
    %c0_i32 = arith.constant 0 : i32
    %c0_i32_0 = arith.constant 0 : i32
    %c0_i32_1 = arith.constant 0 : i32
    return %c0_i32, %c0_i32_0 : i32, i32
  }
  func.func @transform_4(%arg0: i32) -> (i32, i32) {
    %c0_i32 = arith.constant 0 : i32
    %c0_i32_0 = arith.constant 0 : i32
    %c0_i32_1 = arith.constant 0 : i32
    return %c0_i32, %c0_i32_0 : i32, i32
  }
  func.func @transform_5(%arg0: i32) -> (i32, i32) {
    %c0_i32 = arith.constant 0 : i32
    %c0_i32_0 = arith.constant 0 : i32
    %c0_i32_1 = arith.constant 0 : i32
    return %c0_i32, %c0_i32_0 : i32, i32
  }
  func.func @transform_6(%arg0: i32) -> (i32, i32) {
    %c0_i32 = arith.constant 0 : i32
    %c0_i32_0 = arith.constant 0 : i32
    %c0_i32_1 = arith.constant 0 : i32
    return %c0_i32, %c0_i32_0 : i32, i32
  }
  func.func @transform_7(%arg0: i32) -> (i32, i32, i32) {
    %c0_i32 = arith.constant 0 : i32
    %c0_i32_0 = arith.constant 0 : i32
    %c0_i32_1 = arith.constant 0 : i32
    return %arg0, %c0_i32, %c0_i32_0 : i32, i32, i32
  }
}

</mosaic_0001>

<bundles_post_ra>
// kernel: tpu_custom_call.1
= control target key start
LH: loop header
LB: loop body
LE: loop exit
PB: predicated region body
PF: predicated region fallthrough
CT: control target
= control target key end

     0   :  { %12 = vsyncpa [#allocation3], 0  ;;  %s1770_s0 = inlined_call_operand.vmem [shape: f32[2,8,256], index: 0, kind: input, shape index: {}]   ;;  %s1771_s1 = inlined_call_operand.vmem [shape: f32[8,4], index: 1, kind: input, shape index: {}]   ;;  %s1772_s2 = inlined_call_operand.hbm [shape: f32[8,8], index: 2, kind: input, shape index: {}]   ;;  %s1773_s3 = inlined_call_operand.hbm [shape: f32[9,256], index: 3, kind: input, shape index: {}]   ;;  %s1774_s4 = inlined_call_operand.vmem [shape: f32[16,8], index: 4, kind: input, shape index: {}]   ;;  %s1775_s5 = inlined_call_operand.hbm [shape: f32[8,72], index: 5, kind: input, shape index: {}]   ;;  %s1776_s6 = inlined_call_operand.hbm [shape: f32[8,8], index: 6, kind: input, shape index: {}]   ;;  %s1777_s7 = inlined_call_operand.hbm [shape: f32[2,8,256], index: 7, kind: output, shape index: {}]  }
   0x1   :  { %13 = vsyncpa [#allocation6], 0 }
   0x2   :  { %14 = vsyncpa [#allocation9], 0 }
   0x3   :  { %15 = vsyncpa [#allocation4], 0 }
   0x4   :  { %17 = vsyncpa [#allocation4 + $0x1], 0  ;;  %s1510_s24 = smov 0   ;;  %s1512_s25 = smov 0  }
   0x5   :  { %s1514_s26 = smov 0   ;;  %s1516_s27 = smov 0  }
   0x6 LB: > { %s1531_s28 = sadd.s32 4294967295, %s1448_s27   ;;  %s1125_s29 = sadd.s32 4294967294, %s1448_s27   ;;  %s1448_s27 = sphi %s1516_s27, %s1795_s27   ;;  %s1444_s26 = sphi %s1514_s26, %s1794_s26   ;;  %s1440_s25 = sphi %s1512_s25, %s1793_s25   ;;  %s1436_s24 = sphi %s1510_s24, %s1792_s24  }
   0x7   : > { %s1535_s30 = sadd.s32 1, %s1448_s27   ;;  %s182_s8 = sadd.s32 1, %s1444_s26 }
   0x8   : > { %s179_s9 = ssub.s32 %s1448_s27, %s1535_s30  ;;  %p192_p0 = scmp.ne.s32.totalorder %s1444_s26, %s1440_s25 }
   0x9   : > { %p180_p1 = scmp.eq.s32.totalorder %s179_s9, 0  ;;  %p193_p2 = scmp.eq.s32.totalorder %s1531_s28, 1 }
   0xa   : > { %p198_p3 = scmp.ne.s32.totalorder %s1440_s25, %s1436_s24  ;;  %p199_p4 = scmp.eq.s32.totalorder %s1125_s29, 1 }
   0xb   : > { %s1546_s10 = scalar_select %p180_p1, %s1444_s26, %s182_s8  }
   0xc   : > { %p1548_p5 = por %p193_p2, %p192_p0  ;;  %p1552_p6 = por %p199_p4, %p198_p3 }
   0xd   : > { %p1126_p7 = scmp.ge.s32.totalorder %s1448_s27, 1  ;;  %p206_p8 = scmp.lt.s32.totalorder %s1448_s27, 3 }
   0xe   : > { %s1780_s11 = scalar_select %p1548_p5, 1, 0 }
   0xf   : > { %s1781_s12 = scalar_select %p1552_p6, 1, 0 }
  0x10   : > { %p1778_p9 = scmp.eq.s32.totalorder %s1531_s28, 0  ;;  %p1559_p10 = pnand %p1126_p7, %p206_p8 }
  0x11   : > { %s1450_s14 = smov [#allocation5]   ;;  %s1451_s17 = smov [#allocation2]  }
  0x12   : > { %s232_s15 = sshll.u32 %s1450_s14, 4  ;;  %p1175_p11 = pneg %p1559_p10  ;;  %s233_s15 = int_to_ptr.vmem [resolvable:$true] %s232_s15 }
  0x13   : > { %s222_s18 = sshll.u32 %s1451_s17, 4  ;;  %s1452_s19 = smov [#allocation7]   ;;  %s223_s18 = int_to_ptr.vmem [resolvable:$true] %s222_s18 }
  0x14   : > { %p1567_p12 = pnand %p1778_p9, %p1175_p11  ;;  %s249_s20 = sshll.u32 %s1452_s19, 4  ;;  %s250_s20 = int_to_ptr.vmem [resolvable:$true] %s249_s20 }
  0x15   : > { %s1283_s21 = scalar_lea.vmem %s233_s15, 512  ;;  %p1291_p3 = scmp.lt.s32.totalorder %s233_s15, %s233_s15 }
  0x16   : > { %p1274_p13 = pneg %p1567_p12  ;;  %p1284_p0 = scmp.ne.s32.totalorder %s233_s15, %s1283_s21 }
  0x17   : > { %p1292_p4 = scmp.lt.s32.totalorder %s1283_s21, %s1283_s21 }
  0x18   : > { %p1286_p1 = pnand %p1284_p0, %p1274_p13 }
  0x19   : > { %p1293_p7 = por %p1292_p4, %p1291_p3 }
  0x1a   : > { %p1287_p2 = pneg %p1286_p1 }
  0x1c   : > { %p1294_p8 = pnand %p1293_p7, %p1287_p2 }
  0x1e   : > { %1297 = shalt.err (!%p1294_p8)
}
  0x1f   : > { %s1453_s22 = smov 256   ;;  %s1454_s23 = smov 16  }
  0x20   : > { %1181 = dma.hbm_to_vmem [thread:$0]  (!%p1567_p12), %s1773_s3, 512, %s233_s15, [#allocation6], %s1453_s22, %s1453_s22, %s1454_s23  }
  0x21   : > { %s1309_s9 = scalar_lea.vmem %s223_s18, 128  ;;  %p1317_p9 = scmp.lt.s32.totalorder %s223_s18, %s223_s18 }
  0x22   : > { %p1310_p11 = scmp.ne.s32.totalorder %s223_s18, %s1309_s9  ;;  %p1318_p6 = scmp.lt.s32.totalorder %s1309_s9, %s1309_s9 }
  0x24   : > { %p1312_p0 = pnand %p1310_p11, %p1274_p13  ;;  %p1319_p3 = por %p1318_p6, %p1317_p9 }
  0x26   : > { %p1313_p1 = pneg %p1312_p0 }
  0x28   : > { %p1320_p2 = pnand %p1319_p3, %p1313_p1 }
  0x2a   : > { %1323 = shalt.err (!%p1320_p2)
}
  0x2b   : > { %1178 = dma.hbm_to_vmem [thread:$0]  (!%p1567_p12), %s1772_s2, 128, %s223_s18, [#allocation3]  }
  0x2c   : > { %s1335_s15 = scalar_lea.vmem %s250_s20, 128  ;;  %p1343_p11 = scmp.lt.s32.totalorder %s250_s20, %s250_s20 }
  0x2d   : > { %p1336_p4 = scmp.ne.s32.totalorder %s250_s20, %s1335_s15  ;;  %p1344_p0 = scmp.lt.s32.totalorder %s1335_s15, %s1335_s15 }
  0x2f   : > { %p1338_p7 = pnand %p1336_p4, %p1274_p13  ;;  %p1345_p5 = por %p1344_p0, %p1343_p11 }
  0x31   : > { %p1339_p8 = pneg %p1338_p7 }
  0x33   : > { %p1346_p6 = pnand %p1345_p5, %p1339_p8 }
  0x35   : > { %1349 = shalt.err (!%p1346_p6)
}
  0x36   : > { %1184 = dma.hbm_to_vmem [thread:$0]  (!%p1567_p12), %s1775_s5, 128, %s250_s20, [#allocation6]  }
  0x37   : > { %s1455_s18 = smov [#allocation8]  }
  0x38   : > { %s260_s22 = sshll.u32 %s1455_s18, 4  ;;  %s261_s22 = int_to_ptr.vmem [resolvable:$true] %s260_s22 }
  0x39   : > { %s1361_s23 = scalar_lea.vmem %s261_s22, 128  ;;  %p1369_p2 = scmp.lt.s32.totalorder %s261_s22, %s261_s22 }
  0x3a   : > { %p1362_p9 = scmp.ne.s32.totalorder %s261_s22, %s1361_s23  ;;  %p1370_p4 = scmp.lt.s32.totalorder %s1361_s23, %s1361_s23 }
  0x3c   : > { %p1364_p1 = pnand %p1362_p9, %p1274_p13  ;;  %p1371_p5 = por %p1370_p4, %p1369_p2 }
  0x3e   : > { %p1365_p3 = pneg %p1364_p1 }
  0x40   : > { %p1372_p7 = pnand %p1371_p5, %p1365_p3 }
  0x42   : > { %1375 = shalt.err (!%p1372_p7)
}
  0x43   : > { %1187 = dma.hbm_to_vmem [thread:$0]  (!%p1567_p12), %s1776_s6, 128, %s261_s22, [#allocation9]  }
  0x44   : > { %281 = sbr.rel (%p1559_p10) target bundleno = 1518 (0x5ee), region = 48  ;;  %p1784_p8 = scmp.eq.s32.totalorder (!%p1559_p10), %s1531_s28, 0 }
  0x49   : > { %1419 = dma.done.wait (%p1784_p8), [#allocation3], 128   ;;  %p1785_p13 = pmov %p1784_p8 }
  0x4a   : > { %p1786_p11 = pmov %p1784_p8 }
  0x4b   : > { %1421 = vsyncadd (%p1785_p13), [#allocation3], 4294967168 }
  0x4c   : > { %1423 = dma.done.wait (%p1786_p11), [#allocation6], 640   ;;  %p1787_p0 = pmov %p1784_p8 }
  0x4e   : > { %1425 = vsyncadd (%p1787_p0), [#allocation6], 4294966656  ;;  %p1788_p6 = pmov %p1787_p0 }
  0x4f   : > { %p1789_p12 = pmov %p1787_p0 }
  0x50   : > { %1427 = dma.done.wait (%p1788_p6), [#allocation9], 128  }
  0x51   : > { %1429 = vsyncadd (%p1789_p12), [#allocation9], 4294967168  ;;  %p325_p10 = scmp.lt.s32.totalorder %s1531_s28, 1  ;;  %v1456_v0 = vmov 0.0   ;;  %v331_v3 = vld [vmem:[#allocation2] sm:$0xff]  ;;  %vm342_vm0 = vcmask 64512  }
  0x52   : > { %410 = vmatprep.mubr.f32.mxu0 %v1456_v0  ;;  %876 = vmatprep.mubr.f32.mxu1 %v1456_v0  ;;  %v1457_v12 = vmov 0   ;;  %v1458_v18 = vmov 1   ;;  %v1643_v19 = vld [vmem:[%s1771_s1] sm:$0xff]  ;;  %s1459_s19 = smov 1   ;;  %v1460_v23 = vmov 2   ;;  %v337_v54 = vld [vmem:[%s1774_s4 + $0x8] sm:$0xff] }
  0x53   : > { %s326_s13 = scalar_select %p325_p10, %s1531_s28, 1  ;;  %1252 = vset.pattern.permute.xlu1 %v1457_v12  ;;  %1253 = vset.pattern.permute.xlu0 %v1458_v18  ;;  %v336_v53 = vld [vmem:[%s1774_s4] sm:$0xff]  ;;  %v339_v59 = vld [vmem:[#allocation8] sm:$0xff]  ;;  %v1468_v60 = vmov 3   ;;  %vm788_vm3 = vcmask 908288   ;;  %vm768_vm4 = vcmask 916480  }
  0x54   : > { %s1461_s29 = smov 111   ;;  %s1462_s8 = smov 15   ;;  %vm748_vm5 = vcmask 924672   ;;  %vm728_vm6 = vcmask 1039360   ;;  %vm689_vm7 = vcmask 121856   ;;  %vm709_vm8 = vcmask 7168  }
  0x55   : > { %s1155_s16 = sshll.u32 %s326_s13, 4  ;;  %s1463_s13 = smov 112   ;;  %vm669_vm9 = vcmask 130048   ;;  %vm649_vm10 = vcmask 138240   ;;  %vm808_vm11 = vcmask 588800  }
  0x56   : > { %s329_s14 = scalar_lea.vmem %s1770_s0, %s1155_s16  ;;  %s1464_s16 = smov 16  }
  0x57   : > { %v1626_v1 = vld [vmem:[%s329_s14 + $0x8] sm:$0xff]  ;;  %v1628_v2 = vld [vmem:[%s329_s14] sm:$0xff]  ;;  %s1465_s20 = smov 113   ;;  %s1466_s9 = smov 17  }
  0x58   : > { %376 = vmatprep.subr.mxu0 %v1626_v1  ;;  %v418_v4 = vmul.f32 %v1626_v1, %v1626_v1  ;;  %v417_v5 = vmul.f32 %v1628_v2, %v1628_v2  ;;  %s1467_s14 = smov 127   ;;  %s322_s17 = sand.u32 1, %s1440_s25  }
  0x59   : > { %377 = vmatpush1.msra.mxu0 %v1628_v2  ;;  %s1137_s15 = sshll.u32 %s322_s17, 4  ;;  %p1790_p1 = scmp.ne.s32.totalorder %s1780_s11, 0 }
  0x5a   : > { %1140 = vmatmul.mubr.msk.f32.vlgmr.msra.gmra.mxu0 %vm342_vm0, %v331_v3  ;;  %449 = vmatprep.subr.mxu0 %v418_v4  ;;  %s324_s21 = scalar_lea.vmem [#allocation10], %s1137_s15 }
  0x5b   : > { %450 = vmatpush1.msra.mxu0 %v417_v5  ;;  %483 = vmatprep.mubr.f32.mxu0 %v1456_v0  ;;  %s1025_s18 = sshll.u32 %s324_s21, 4  ;;  %s1026_s18 = int_to_ptr.vmem [resolvable:$true] %s1025_s18 }
  0x5e   : > { %1141 = vmatmul.mubr.msk.f32.vlgmr.msra.gmra.mxu0 %vm342_vm0, %v331_v3 }
  0x5f   : > { %629 = vmatprep.mubr.f32.mxu0 %v1456_v0 }
 0x11a   : > { %v412_v6 = vpop.f32.mrf.mxu0 }
 0x11c   : > { %v414_v7 = vpop.f32.mrf.mxu0 }
 0x11d   : > { %v490_v8 = vadd.f32 %v414_v7, %v412_v6  ;;  %v1147_v6 = vld [vmem:[#allocation5 + $0x18] ss:$0 sm:$0xff]  ;;  %v1146_v7 = vld [vmem:[#allocation5 + $0x10] ss:$0 sm:$0xff] }
 0x11e   : > { %v485_v9 = vpop.f32.mrf.mxu0 }
 0x11f   : > { %491 = vadd.xlane.f32.xlu0 %v490_v8  ;;  %v1696_v8 = vld [vmem:[#allocation5] sm:$0xff] }
 0x120   : > { %v487_v10 = vpop.f32.mrf.mxu0 }
 0x121   : > { %v493_v11 = vadd.f32 %v487_v10, %v485_v9  ;;  %v1698_v10 = vld [vmem:[#allocation5 + $0x8] sm:$0xff] }
 0x123   : > { %494 = vadd.xlane.f32.xlu0 %v493_v11 }
 0x1a8   : > { %v492_v13 = vpop.xlane.xlu0 %491 }
 0x1a9   : > { %v496_v14 = vmul.f32 %v492_v13, %v492_v13 }
 0x1ac   : > { %v495_v15 = vpop.xlane.xlu0 %494 }
 0x1ad   : > { %v497_v16 = vsub.f32 %v495_v15, %v496_v14 }
 0x1af   : > { %v498_v17 = vadd.f32 1e-05, %v497_v16 }
 0x1b1   : > { %1256 = vrsqrt.f32 %v498_v17 }
 0x1be   : > { %v1257_v20 = vpop.eup %1256 }
 0x1bf   : > { %v500_v21 = vmul.f32 %v1257_v20, %v1643_v19 }
 0x1c1   : > { %v501_v22 = vmul.f32 %v500_v21, %v492_v13 }
 0x1c3   : > { %503 = vrot.lane.b32.xlu1 %v501_v22, %s1459_s19 }
 0x1c7   : > { %509 = vperm.xlu1 %1252, %v500_v21  }
 0x1cb   : > { %1254 = vset.pattern.permute.xlu1 %v1460_v23 }
 0x1cc   : > { %523 = vperm.xlu1 %1254, %v1643_v19  }
 0x235   : > { %v504_v24 = vpop.permute.xlu1 %503 }
 0x236   : > { %v506_v25 = vsub.f32 %v1643_v19, %v504_v24 }
 0x238   : > { %516 = vperm.xlu0 %1253, %v506_v25  }
 0x23c   : > { %1255 = vset.pattern.permute.xlu0 %v1468_v60 }
 0x242   : > { %v510_v26 = vpop.permute.xlu1 %509 }
 0x243   : > { %v512_v27 = vmul.f32 %v510_v26, %v1628_v2  ;;  %v513_v28 = vmul.f32 %v510_v26, %v1626_v1 }
 0x247   : > { %v524_v30 = vpop.permute.xlu1 %523 }
 0x2b3   : > { %v517_v29 = vpop.permute.xlu0 %516 }
 0x2b4   : > { %v519_v31 = vadd.f32 %v517_v29, %v512_v27  ;;  %v520_v32 = vadd.f32 %v517_v29, %v513_v28 }
 0x2b6   : > { %v526_v33 = vmul.f32 %v524_v30, %v519_v31  ;;  %v527_v34 = vmul.f32 %v524_v30, %v520_v32 }
 0x2b8   : > { %v1142_v35 = vmul.f32 -1.442695, %v526_v33  ;;  %v1143_v36 = vmul.f32 -1.442695, %v527_v34 }
 0x2ba   : > { %1258 = vpow2.f32 %v1142_v35 }
 0x2bb   : > { %1260 = vpow2.f32 %v1143_v36 }
 0x2c7   : > { %v1259_v37 = vpop.eup %1258 }
 0x2c8   : > { %v1261_v38 = vpop.eup %1260  ;;  %v534_v39 = vadd.f32 1.0, %v1259_v37 }
 0x2c9   : > { %v535_v40 = vadd.f32 1.0, %v1261_v38 }
 0x2ca   : > { %1262 = vrcp.f32 %v534_v39 }
 0x2cb   : > { %1264 = vrcp.f32 %v535_v40 }
 0x2d7   : > { %v1263_v41 = vpop.eup %1262 }
 0x2d8   : > { %v1265_v42 = vpop.eup %1264  ;;  %vm540_vm1 = vcmp.gt.f32.partialorder %v1263_v41, 0.5  ;;  %v542_v43 = vmul.f32 %v1263_v41, %v1628_v2 }
 0x2d9   : > { %vm541_vm2 = vcmp.gt.f32.partialorder %v1265_v42, 0.5  ;;  %v543_v44 = vmul.f32 %v1265_v42, %v1626_v1 }
 0x2da   : > { %v546_v45 = vsel %vm540_vm1, 0.0, %v542_v43  ;;  %v544_v49 = vsel %vm540_vm1, %v1628_v2, %v542_v43 }
 0x2db   : > { %v547_v46 = vsel %vm541_vm2, 0.0, %v543_v44  ;;  %v550_v47 = vrot.slane %v546_v45, 4  ;;  %v545_v50 = vsel %vm541_vm2, %v1626_v1, %v543_v44  ;;  %v654_v1 = vlaneseq }
 0x2dc   : > { %v551_v48 = vrot.slane %v547_v46, 4 }
 0x2dd   : > { %v557_v51 = vadd.f32 %v550_v47, %v544_v49  ;;  %v1691_v3 = vshrl.u32 %v654_v1, 7 }
 0x2de   : > { %v558_v52 = vadd.f32 %v551_v48, %v545_v50 }
 0x2df   : > { %v776_v5 = vsub.s32 7, %v1691_v3  ;;  %v756_v17 = vsub.s32 6, %v1691_v3  ;;  %v736_v21 = vsub.s32 5, %v1691_v3  ;;  %v716_v33 = vsub.s32 3, %v1691_v3 }
 0x2e0   : > { %595 = vmatprep.subr.mxu0 %v558_v52  ;;  %v696_v35 = vsub.s32 2, %v1691_v3  ;;  %v676_v37 = vsub.s32 1, %v1691_v3 }
 0x2e1   : > { %596 = vmatpush1.msra.mxu0 %v557_v51  ;;  %v777_v13 = vrot.slane %v1696_v8, %v776_v5  ;;  %v781_v15 = vrot.slane %v1698_v10, %v776_v5  ;;  %v757_v24 = vrot.slane %v1696_v8, %v756_v17  ;;  %v761_v25 = vrot.slane %v1698_v10, %v756_v17 }
 0x2e2   : > { %1144 = vmatmul.mubr.msk.f32.vlgmr.msra.gmra.mxu0 %vm342_vm0, %v336_v53  ;;  %v737_v29 = vrot.slane %v1696_v8, %v736_v21  ;;  %v741_v32 = vrot.slane %v1698_v10, %v736_v21  ;;  %v717_v42 = vrot.slane %v1696_v8, %v716_v33  ;;  %v721_v43 = vrot.slane %v1698_v10, %v716_v33 }
 0x2e3   : > { %635 = vmatprep.mubr.f32.mxu0 %v1456_v0  ;;  %v697_v44 = vrot.slane %v1696_v8, %v696_v35  ;;  %v701_v45 = vrot.slane %v1698_v10, %v696_v35  ;;  %v677_v47 = vrot.slane %v1696_v8, %v676_v37  ;;  %v681_v51 = vrot.slane %v1698_v10, %v676_v37 }
 0x2e6   : > { %1145 = vmatmul.mubr.msk.f32.gmra.mxu0 %vm342_vm0, %v337_v54 }
 0x2e7   : > { %950 = vmatprep.mubr.f32.mxu0 %v1456_v0 }
 0x3a2   : > { %v1665_v55 = vpop.f32.mrf.mxu0 }
 0x3a3   : > { %784 = vrot.lane.b32.xlu1 %v1665_v55, %s1461_s29 }
 0x3a4   : > { %v1668_v56 = vpop.f32.mrf.mxu0 }
 0x3a5   : > { %684 = vrot.lane.b32.xlu0 %v1668_v56, %s1462_s8 }
 0x3a6   : > { %v637_v57 = vpop.f32.mrf.mxu0 }
 0x3a7   : > { %764 = vrot.lane.b32.xlu1 %v1665_v55, %s1463_s13 }
 0x3a8   : > { %v639_v58 = vpop.f32.mrf.mxu0 }
 0x3a9   : > { %664 = vrot.lane.b32.xlu0 %v1668_v56, %s1464_s16  ;;  %916 = vmatprep.subr.mxu0 %v639_v58  ;;  %v656_v58 = vsub.s32 0, %v1691_v3 }
 0x3aa   : > { %917 = vmatpush1.msra.mxu0 %v637_v57 }
 0x3ab   : > { %744 = vrot.lane.b32.xlu1 %v1665_v55, %s1465_s20  ;;  %1149 = vmatmul.mubr.msk.f32.vlgmr.msra.gmra.mxu0 %vm342_vm0, %v339_v59 }
 0x3ad   : > { %643 = vrot.lane.b32.xlu0 %v1668_v56, %s1466_s9 }
 0x3af   : > { %724 = vrot.lane.b32.xlu1 %v1665_v55, %s1467_s14 }
 0x3b1   : > { %805 = vperm.xlu0 %1255, %v1643_v19  }
 0x3b3   : > { %707 = vrot.lane.b32.xlu1 %v1665_v55, %s1459_s19 }
 0x3b7   : > { %687 = vrot.lane.b32.xlu1 %v1665_v55, %s1462_s8  ;;  %s1011_s8 = scalar_lea.sflag [#allocation4], %s322_s17 }
 0x3bb   : > { %786 = vrot.lane.b32.xlu1 %v1668_v56, %s1461_s29 }
 0x3bf   : > { %766 = vrot.lane.b32.xlu1 %v1668_v56, %s1463_s13  ;;  %s1376_s13 = scalar_lea.vmem %s1026_s18, 256 }
 0x3c0   : > { %p1377_p9 = scmp.ne.s32.totalorder %s1026_s18, %s1376_s13 }
 0x3c2   : > { %p1378_p3 = pnand %p1377_p9, %p1790_p1 }
 0x3c3   : > { %746 = vrot.lane.b32.xlu1 %v1668_v56, %s1465_s20 }
 0x3c4   : > { %p1379_p2 = pneg %p1378_p3 }
 0x3c7   : > { %726 = vrot.lane.b32.xlu1 %v1668_v56, %s1467_s14 }
 0x3cb   : > { %704 = vrot.lane.b32.xlu1 %v1668_v56, %s1459_s19  ;;  %s1156_s19 = sshll.u32 %s1531_s28, 8  ;;  %s1469_s28 = smov [#allocation10]  }
 0x3cc   : > { %s1735_s29 = scalar_lea.hbm %s1777_s7, %s1156_s19 }
 0x3cf   : > { %667 = vrot.lane.b32.xlu1 %v1665_v55, %s1464_s16  ;;  %s1380_s16 = sshll.u32 %s1469_s28, 4  ;;  %s1381_s16 = int_to_ptr.vmem [resolvable:$false] %s1380_s16 }
 0x3d0   : > { %s1382_s20 = scalar_lea.vmem %s1381_s16, 512  ;;  %p1383_p4 = scmp.lt.s32.totalorder %s1026_s18, %s1381_s16 }
 0x3d1   : > { %p1384_p5 = scmp.lt.s32.totalorder %s1382_s20, %s1376_s13 }
 0x3d3   : > { %647 = vrot.lane.b32.xlu1 %v1665_v55, %s1466_s9  ;;  %p1385_p7 = por %p1384_p5, %p1383_p4 }
 0x3d5   : > { %p1386_p8 = pnand %p1385_p7, %p1379_p2 }
 0x415   : > { %v785_v61 = vpop.permute.xlu1 %784 }
 0x417   : > { %v685_v34 = vpop.permute.xlu0 %684 }
 0x419   : > { %v765_v62 = vpop.permute.xlu1 %764 }
 0x41b   : > { %v665_v52 = vpop.permute.xlu0 %664 }
 0x41d   : > { %v745_v63 = vpop.permute.xlu1 %744 }
 0x41f   : > { %v644_v3 = vpop.permute.xlu0 %643 }
 0x421   : > { %v725_v0 = vpop.permute.xlu1 %724 }
 0x425   : > { %v1689_v2 = vpop.permute.xlu1 %707 }
 0x429   : > { %v1693_v4 = vpop.permute.xlu1 %687 }
 0x42a   : > { %v690_v48 = vsel %vm689_vm7, %v1693_v4, %v685_v34  ;;  %v693_v53 = vsel %vm689_vm7, %v685_v34, %v1693_v4 }
 0x42b   : > { %v703_v59 = vmul.f32 %v701_v45, %v690_v48 }
 0x42d   : > { %v787_v9 = vpop.permute.xlu1 %786 }
 0x42e   : > { %v789_v11 = vsel %vm788_vm3, %v785_v61, %v787_v9  ;;  %v793_v12 = vsel %vm788_vm3, %v787_v9, %v785_v61  ;;  %v702_v61 = vmul.f32 %v697_v44, %v693_v53  ;;  %v338_v9 = vld [vmem:[#allocation7] sm:$0xff] }
 0x42f   : > { %v803_v14 = vmul.f32 %v1147_v6, %v793_v12  ;;  %v802_v16 = vmul.f32 %v1146_v7, %v789_v11 }
 0x431   : > { %826 = vmatprep.subr.mxu1 %v803_v14  ;;  %v767_v18 = vpop.permute.xlu1 %766 }
 0x432   : > { %v769_v19 = vsel %vm768_vm4, %v765_v62, %v767_v18  ;;  %v773_v20 = vsel %vm768_vm4, %v767_v18, %v765_v62  ;;  %827 = vmatpush1.msra.mxu1 %v802_v16 }
 0x433   : > { %v782_v22 = vmul.f32 %v777_v13, %v769_v19  ;;  %v783_v23 = vmul.f32 %v781_v15, %v773_v20 }
 0x435   : > { %828 = vmatprep.subr.mxu1 %v783_v23  ;;  %v747_v26 = vpop.permute.xlu1 %746 }
 0x436   : > { %v749_v27 = vsel %vm748_vm5, %v745_v63, %v747_v26  ;;  %v753_v28 = vsel %vm748_vm5, %v747_v26, %v745_v63  ;;  %829 = vmatpush1.msra.mxu1 %v782_v22 }
 0x437   : > { %v762_v30 = vmul.f32 %v757_v24, %v749_v27  ;;  %v763_v31 = vmul.f32 %v761_v25, %v753_v28 }
 0x439   : > { %830 = vmatprep.subr.mxu1 %v763_v31  ;;  %v727_v36 = vpop.permute.xlu1 %726 }
 0x43a   : > { %v729_v38 = vsel %vm728_vm6, %v725_v0, %v727_v36  ;;  %v733_v39 = vsel %vm728_vm6, %v727_v36, %v725_v0  ;;  %831 = vmatpush1.msra.mxu1 %v762_v30 }
 0x43b   : > { %v742_v40 = vmul.f32 %v737_v29, %v729_v38  ;;  %v743_v41 = vmul.f32 %v741_v32, %v733_v39 }
 0x43d   : > { %832 = vmatprep.subr.mxu1 %v743_v41  ;;  %v705_v46 = vpop.permute.xlu1 %704 }
 0x43e   : > { %v710_v49 = vsel %vm709_vm8, %v1689_v2, %v705_v46  ;;  %v713_v50 = vsel %vm709_vm8, %v705_v46, %v1689_v2  ;;  %833 = vmatpush1.msra.mxu1 %v742_v40  ;;  %v657_v2 = vrot.slane %v1696_v8, %v656_v58 }
 0x43f   : > { %v722_v54 = vmul.f32 %v717_v42, %v713_v50  ;;  %v723_v57 = vmul.f32 %v721_v43, %v710_v49  ;;  %834 = vmatprep.subr.mxu1 %v1668_v56  ;;  %v661_v56 = vrot.slane %v1698_v10, %v656_v58  ;;  %v806_v10 = vpop.permute.xlu0 %805 }
 0x440   : > { %835 = vmatpush1.msra.mxu1 %v1665_v55 }
 0x441   : > { %836 = vmatprep.subr.mxu1 %v723_v57  ;;  %v668_v60 = vpop.permute.xlu1 %667 }
 0x442   : > { %v670_v62 = vsel %vm669_vm9, %v668_v60, %v665_v52  ;;  %v673_v63 = vsel %vm669_vm9, %v665_v52, %v668_v60  ;;  %837 = vmatpush1.msra.mxu1 %v722_v54 }
 0x443   : > { %v682_v0 = vmul.f32 %v677_v47, %v673_v63  ;;  %v683_v1 = vmul.f32 %v681_v51, %v670_v62  ;;  %838 = vmatprep.subr.mxu1 %v703_v59 }
 0x444   : > { %839 = vmatpush1.msra.mxu1 %v702_v61 }
 0x445   : > { %840 = vmatprep.subr.mxu1 %v683_v1  ;;  %v648_v55 = vpop.permute.xlu1 %647 }
 0x446   : > { %v650_v4 = vsel %vm649_vm10, %v648_v55, %v644_v3  ;;  %v653_v5 = vsel %vm649_vm10, %v644_v3, %v648_v55  ;;  %841 = vmatpush1.msra.mxu1 %v682_v0 }
 0x447   : > { %v662_v6 = vmul.f32 %v657_v2, %v653_v5  ;;  %v663_v7 = vmul.f32 %v661_v56, %v650_v4 }
 0x449   : > { %842 = vmatprep.subr.mxu1 %v663_v7 }
 0x44a   : > { %843 = vmatpush1.msra.mxu1 %v662_v6 }
 0x44b   : > { %1148 = vmatmul.mubr.msk.f32.vlgmr.msra.gmra.mxu1 %vm808_vm11, %v338_v9 }
 0x46b   : > { %v952_v11 = vpop.f32.mrf.mxu0 }
 0x46d   : > { %v954_v12 = vpop.f32.mrf.mxu0 }
 0x46e   : > { %v962_v13 = vadd.f32 %v954_v12, %v952_v11 }
 0x470   : > { %963 = vadd.xlane.f32.xlu0 %v962_v13 }
 0x4f9   : > { %v964_v18 = vpop.xlane.xlu0 %963 }
 0x4fa   : > { %v965_v19 = vmul.f32 0.00390625, %v964_v18 }
 0x4fc   : > { %v972_v20 = vrot.slane %v965_v19, 4 }
 0x4fe   : > { %v973_v21 = vmax.f32 %v965_v19, %v972_v20 }
 0x500   : > { %v974_v23 = vrot.slane %v973_v21, 2 }
 0x502   : > { %v975_v26 = vmax.f32 %v973_v21, %v974_v23 }
 0x504   : > { %v976_v29 = vrot.slane %v975_v26, 1 }
 0x506   : > { %v977_v33 = vmax.f32 %v975_v26, %v976_v29 }
 0x50b   : > { %v878_v8 = vpop.f32.mrf.mxu1 }
 0x50c   : > { %v879_v15 = vadd.f32 %v878_v8, %v806_v10 }
 0x50d   : > { %v880_v14 = vpop.f32.mrf.mxu1 }
 0x50e   : > { %v881_v16 = vadd.f32 %v880_v14, %v806_v10 }
 0x510   : > { %v957_v17 = vadd.f32 %v881_v16, %v879_v15 }
 0x512   : > { %958 = vadd.xlane.f32.xlu1 %v957_v17 }
 0x59b   : > { %v959_v22 = vpop.xlane.xlu1 %958 }
 0x59c   : > { %v961_v24 = vmul.f32 0.00390625, %v959_v22 }
 0x59e   : > { %v966_v25 = vrot.slane %v961_v24, 4 }
 0x5a0   : > { %v967_v27 = vmax.f32 %v961_v24, %v966_v25 }
 0x5a2   : > { %v968_v28 = vrot.slane %v967_v27, 2 }
 0x5a4   : > { %v969_v30 = vmax.f32 %v967_v27, %v968_v28 }
 0x5a6   : > { %v970_v31 = vrot.slane %v969_v30, 1 }
 0x5a8   : > { %v971_v32 = vmax.f32 %v969_v30, %v970_v31 }
 0x5aa   : > { %v978_v34 = vmax.f32 %v971_v32, %v977_v33 }
 0x5ac   : > { %v979_v35 = vsub.f32 %v961_v24, %v978_v34  ;;  %v982_v36 = vsub.f32 %v965_v19, %v978_v34 }
 0x5ae   : > { %v980_v37 = vmul.f32 1.442695, %v979_v35  ;;  %v983_v38 = vmul.f32 1.442695, %v982_v36 }
 0x5b0   : > { %1266 = vpow2.f32 %v980_v37 }
 0x5b1   : > { %1268 = vpow2.f32 %v983_v38 }
 0x5bd   : > { %v1267_v39 = vpop.eup %1266 }
 0x5be   : > { %v1269_v40 = vpop.eup %1268  ;;  %v985_v41 = vrot.slane %v1267_v39, 4 }
 0x5bf   : > { %v991_v42 = vrot.slane %v1269_v40, 4 }
 0x5c0   : > { %v986_v43 = vadd.f32 %v1267_v39, %v985_v41 }
 0x5c1   : > { %v992_v44 = vadd.f32 %v1269_v40, %v991_v42 }
 0x5c2   : > { %v987_v45 = vrot.slane %v986_v43, 2 }
 0x5c3   : > { %v993_v46 = vrot.slane %v992_v44, 2 }
 0x5c4   : > { %v988_v47 = vadd.f32 %v987_v45, %v986_v43 }
 0x5c5   : > { %v994_v48 = vadd.f32 %v993_v46, %v992_v44 }
 0x5c6   : > { %v989_v49 = vrot.slane %v988_v47, 1 }
 0x5c7   : > { %v995_v50 = vrot.slane %v994_v48, 1 }
 0x5c8   : > { %v990_v51 = vadd.f32 %v989_v49, %v988_v47 }
 0x5c9   : > { %v996_v52 = vadd.f32 %v995_v50, %v994_v48 }
 0x5cb   : > { %v997_v53 = vadd.f32 %v996_v52, %v990_v51 }
 0x5cd   : > { %1270 = vrcp.f32 %v997_v53 }
 0x5da   : > { %v1271_v54 = vpop.eup %1270 }
 0x5db   : > { %v1000_v57 = vmul.f32 %v1271_v54, %v1267_v39  ;;  %v1003_v58 = vmul.f32 %v1271_v54, %v1269_v40 }
 0x5dd   : > { %v1001_v59 = vmul.f32 %v1000_v57, %v879_v15  ;;  %v1002_v60 = vmul.f32 %v1000_v57, %v881_v16  ;;  %v1004_v61 = vmul.f32 %v1003_v58, %v952_v11  ;;  %v1005_v62 = vmul.f32 %v1003_v58, %v954_v12 }
 0x5df   : > { %v1006_v63 = vadd.f32 %v1004_v61, %v1001_v59  ;;  %v1007_v0 = vadd.f32 %v1005_v62, %v1002_v60 }
 0x5e1   : > { %1008 = vst [vmem:[%s324_s21] sm:$0xff] %v1006_v63  ;;  %1009 = vst [vmem:[%s324_s21 + $0x8] sm:$0xff] %v1007_v0 }
 0x5e2   : > { %1389 = shalt.err (!%p1386_p8)
}
 0x5e3   : > { %s1390_s9 = scalar_lea.hbm %s1735_s29, 256  ;;  %s1394_s15 = scalar_lea.hbm %s1777_s7, 512 }
 0x5e4   : > { %p1391_p13 = scmp.ne.s32.totalorder %s1735_s29, %s1390_s9  ;;  %p1395_p6 = scmp.lt.s32.totalorder %s1735_s29, %s1777_s7 }
 0x5e5   : > { %p1396_p12 = scmp.lt.s32.totalorder %s1394_s15, %s1390_s9 }
 0x5e6   : > { %p1392_p11 = pnand %p1391_p13, %p1790_p1 }
 0x5e7   : > { %p1397_p10 = por %p1396_p12, %p1395_p6 }
 0x5e8   : > { %p1393_p0 = pneg %p1392_p11 }
 0x5ea   : > { %p1398_p9 = pnand %p1397_p10, %p1393_p0 }
 0x5ec   : > { %1401 = shalt.err (!%p1398_p9)
}
 0x5ed   : > { %1173 = dma.vmem_to_hbm [thread:$0]  (%p1790_p1), %s1026_s18, 256, %s1735_s29, %s1011_s8  }
 0x5ee PF: > { %p1200_p3 = scmp.ge.s32.totalorder %s1448_s27, 2  ;;  %s1037_s22 = sand.u32 1, %s1436_s24  }
 0x5ef   : > { %p1791_p2 = scmp.ne.s32.totalorder %s1781_s12, 0  ;;  %s1038_s23 = scalar_lea.sflag [#allocation4], %s1037_s22 }
 0x5f1   : > { %p1189_p4 = pnand %p1200_p3, %p1791_p2 }
 0x5f3   : > { %p1190_p5 = pneg %p1189_p4 }
 0x5f5   : > { %1431 = dma.done.wait (%p1190_p5), %s1038_s23, 256  }
 0x5f6   : > { %1433 = vsyncadd (%p1190_p5), %s1038_s23, 4294967040  ;;  %p20_p7 = scmp.ge.s32.totalorder %s1535_s30, 4   ;;  %s1792_s24 = smov %s1440_s25 }
 0x5f7   : > { %s1793_s25 = smov %s1444_s26  ;;  %s1794_s26 = smov %s1546_s10 }
 0x5f8   : > { %s1795_s27 = smov %s1535_s30  ;;  %22 = sbr.rel (!%p20_p7) target bundleno = 6 (0x6), region = 100 }
 0x5fd   :  { %1043 = vsyncpa [#allocation3], 1 }
 0x5fe   :  { %1045 = vsyncpa [#allocation3 + $0x1], 1 }
 0x5ff   :  { %1046 = vsyncpa [#allocation6], 1 }
 0x600   :  { %1047 = vsyncpa [#allocation9], 1 }
 0x601   :  { %1048 = vsyncpa [#allocation4], 1 }
 0x602   :  { %1050 = vsyncpa [#allocation4 + $0x1], 1 }

</bundles_post_ra>
